<compile_context>
chip_gen: v5e
topology: v5e:2x2
jax: 0.10.0
libtpu: 0.0.40
codegen_flags: <defaults>
</compile_context>

<pallas_src>
import functools

import jax
import jax.numpy as jnp
from jax.experimental import pallas as pl
from jax.experimental.pallas import tpu as pltpu

_SMALL_COPY_BYTES = 1 << 20   # below this, skip Pallas entirely (launch overhead dominates)
_MULTI_DMA_BYTES = 8 << 20    # above this, split the copy into multiple in-flight DMAs


def _chunked_slice_copy_kernel(enc_hbm_ref, out_hbm_ref, *, chunks):
    """Copy enc[:seq_len, :] -> out using len(chunks) concurrent HBM->HBM DMAs."""
    n = len(chunks)

    def body(sems):
        copies = []
        for i, (start, size) in enumerate(chunks):        # static Python loop
            cp = pltpu.make_async_copy(
                enc_hbm_ref.at[pl.ds(start, size), :],
                out_hbm_ref.at[pl.ds(start, size), :],
                sems.at[i],
            )
            cp.start()
            copies.append(cp)
        for cp in copies:                                  # start all, then wait all
            cp.wait()

    pl.run_scoped(body, pltpu.SemaphoreType.DMA((n,)))     # explicit shaped spelling


def _default_num_chunks(copy_bytes: int) -> int:
    """Pick the number of outstanding DMAs (gated on size and chip generation)."""
    if copy_bytes < _MULTI_DMA_BYTES:
        return 1
    try:
        kind = jax.devices()[0].device_kind.lower()
    except Exception:  # pragma: no cover - defensive only
        kind = ""
    return 4 if "v5" in kind else 8  # fewer, larger chunks on v5e; more on v6e/v7x


def _row_chunks(seq_len: int, num_chunks: int):
    """Split [0, seq_len) rows into up to num_chunks contiguous (start, size) chunks."""
    k = max(1, min(num_chunks, seq_len))
    base, rem = divmod(seq_len, k)
    chunks, start = [], 0
    for i in range(k):
        size = base + (1 if i < rem else 0)
        if size > 0:
            chunks.append((start, size))
            start += size
    return tuple(chunks)


def learnable_positional_encoding(encoding: jax.Array, seq_len: int, *,
                                  force_pallas: bool = False,
                                  num_chunks: int | None = None) -> jax.Array:
    """Return encoding[:, :seq_len, :].

    encoding: (1, max_len, hidden_dim) learnable table
    seq_len:  static Python int (output shape must be static in JAX)
    """
    one, max_len, hidden = encoding.shape
    assert one == 1
    assert 0 < seq_len <= max_len

    # Fast path 1: full-length request is the identity (metadata only, zero bytes moved).
    if seq_len == max_len and not force_pallas:
        return encoding

    dtype_bytes = jnp.dtype(encoding.dtype).itemsize
    copy_bytes = seq_len * hidden * dtype_bytes

    # Fast path 2: tiny slice -> native XLA slice, which can fuse into the consumer
    # and avoids the custom-call launch overhead entirely.
    if copy_bytes < _SMALL_COPY_BYTES and not force_pallas:
        return jax.lax.slice(encoding, (0, 0, 0), (1, seq_len, hidden))

    # Pallas path: k concurrent HBM->HBM DMAs of the contiguous leading rows.
    enc2d = encoding.reshape(max_len, hidden)  # free: drops the size-1 batch dim
    if num_chunks is None:
        num_chunks = _default_num_chunks(copy_bytes)
    chunks = _row_chunks(seq_len, num_chunks)

    out2d = pl.pallas_call(
        functools.partial(_chunked_slice_copy_kernel, chunks=chunks),
        out_shape=jax.ShapeDtypeStruct((seq_len, hidden), encoding.dtype),
        in_specs=[pl.BlockSpec(memory_space=pl.ANY)],   # leave the table in HBM
        out_specs=pl.BlockSpec(memory_space=pl.ANY),    # output written by the DMAs
        cost_estimate=pl.CostEstimate(
            flops=0, transcendentals=0, bytes_accessed=2 * copy_bytes),
    )(enc2d)

    return out2d.reshape(1, seq_len, hidden)


if __name__ == "__main__":
    # Small shapes consistent with the module. (PyTorch inits the table to zeros;
    # we use random values so the sliced copy is actually verifiable.)
    hidden_dim = 32
    max_len = 64

    key = jax.random.PRNGKey(0)
    encoding = jax.random.normal(key, (1, max_len, hidden_dim), dtype=jnp.float32)

    ok = True

    # Dispatcher paths: tiny-slice fast path (8, 24) and full-length identity (64).
    for seq_len in (8, 24, 64):
        out = jax.block_until_ready(learnable_positional_encoding(encoding, seq_len))
        ref = encoding[:, :seq_len, :]
        ok &= out.shape == (1, seq_len, hidden_dim)
        ok &= bool(jnp.array_equal(out, ref))

    # Pallas kernel path: single-DMA and multi-chunk (concurrent DMA) variants.
    for seq_len, k in ((8, 1), (24, 2), (64, 4)):
        out = jax.block_until_ready(
            learnable_positional_encoding(encoding, seq_len,
                                          force_pallas=True, num_chunks=k))
        ref = encoding[:, :seq_len, :]
        ok &= out.shape == (1, seq_len, hidden_dim)
        ok &= bool(jnp.array_equal(out, ref))

    assert ok
    print("KERNEL_OK")
</pallas_src>

<mosaic_0001>
module attributes {stable_mosaic.version = 11 : i64} {
  func.func @_chunked_slice_copy_kernel(%arg0: memref<64x32xf32, #tpu.memory_space<any>>, %arg1: memref<8x32xf32, #tpu.memory_space<any>>) attributes {dimension_semantics = [], scalar_prefetch = 0 : i64, scratch_operands = 0 : i64, tpu.core_type = #tpu.core_type<tc>} {
    "tpu.region"() ({
      %0 = tpu.sem_alloc : memref<1x!tpu.dma_semaphore, #tpu.memory_space<semaphore_mem>>
      %c0_i32 = arith.constant 0 : i32
      %c0_i32_0 = arith.constant 0 : i32
      %c0_i32_1 = arith.constant 0 : i32
      %1 = tpu.memref_slice %arg0[%c0_i32_0, %c0_i32_1] : memref<64x32xf32, #tpu.memory_space<any>> -> memref<8x32xf32, #tpu.memory_space<any>>
      %c0_i32_2 = arith.constant 0 : i32
      %c0_i32_3 = arith.constant 0 : i32
      %2 = tpu.memref_slice %arg1[%c0_i32_2, %c0_i32_3] : memref<8x32xf32, #tpu.memory_space<any>> -> memref<8x32xf32, #tpu.memory_space<any>>
      %3 = tpu.memref_slice %0[%c0_i32] : memref<1x!tpu.dma_semaphore, #tpu.memory_space<semaphore_mem>> -> memref<1x!tpu.dma_semaphore, #tpu.memory_space<semaphore_mem>>
      %4 = tpu.memref_squeeze %3 : memref<1x!tpu.dma_semaphore, #tpu.memory_space<semaphore_mem>> -> memref<!tpu.dma_semaphore, #tpu.memory_space<semaphore_mem>>
      tpu.enqueue_dma source(%1 : memref<8x32xf32, #tpu.memory_space<any>>) target(%2 : memref<8x32xf32, #tpu.memory_space<any>>) target_semaphore(%4 : memref<!tpu.dma_semaphore, #tpu.memory_space<semaphore_mem>>)
      %c0_i32_4 = arith.constant 0 : i32
      %c0_i32_5 = arith.constant 0 : i32
      %c0_i32_6 = arith.constant 0 : i32
      %5 = tpu.memref_slice %arg0[%c0_i32_5, %c0_i32_6] : memref<64x32xf32, #tpu.memory_space<any>> -> memref<8x32xf32, #tpu.memory_space<any>>
      %c0_i32_7 = arith.constant 0 : i32
      %c0_i32_8 = arith.constant 0 : i32
      %6 = tpu.memref_slice %arg1[%c0_i32_7, %c0_i32_8] : memref<8x32xf32, #tpu.memory_space<any>> -> memref<8x32xf32, #tpu.memory_space<any>>
      %7 = tpu.memref_slice %0[%c0_i32_4] : memref<1x!tpu.dma_semaphore, #tpu.memory_space<semaphore_mem>> -> memref<1x!tpu.dma_semaphore, #tpu.memory_space<semaphore_mem>>
      %8 = tpu.memref_squeeze %7 : memref<1x!tpu.dma_semaphore, #tpu.memory_space<semaphore_mem>> -> memref<!tpu.dma_semaphore, #tpu.memory_space<semaphore_mem>>
      tpu.wait_dma2 semaphore(%8 : memref<!tpu.dma_semaphore, #tpu.memory_space<semaphore_mem>>) src(%5 : memref<8x32xf32, #tpu.memory_space<any>>) dst(%6 : memref<8x32xf32, #tpu.memory_space<any>>)
      tpu.yield
    }) : () -> ()
    return
  }
}

</mosaic_0001>

<bundles_post_ra>
// kernel: tpu_custom_call.1
= control target key start
LH: loop header
LB: loop body
LE: loop exit
PB: predicated region body
PF: predicated region fallthrough
CT: control target
= control target key end

     0   :  { %s64_s0 = inlined_call_operand.vmem [shape: f32[64,32], index: 0, kind: input, shape index: {}]   ;;  %s65_s1 = inlined_call_operand.hbm [shape: f32[8,32], index: 1, kind: output, shape index: {}]  }
   0x1   :  { %s13_s8 = sshll.u32 %s64_s0, 4  ;;  %s15_s11 = sshll.u32 %s65_s1, 4  ;;  %s14_s8 = int_to_ptr.vmem [resolvable:$true] %s13_s8  ;;  %s16_s11 = int_to_ptr.hbm [resolvable:$true] %s15_s11 }
   0x2   :  { %18 = dma.vmem_to_hbm [thread:$0]  %s14_s8, 128, %s16_s11, [#allocation2] }
   0x3   :  { %46 = dma.done.wait [#allocation2], 128 }
   0x4   :  { %47 = vsyncadd [#allocation2], 4294967168 }

</bundles_post_ra>
